<compile_context>
chip_gen: v7x
topology: tpu7x:2x2x1
jax: 0.10.0
libtpu: 0.0.40
codegen_flags: <defaults>
</compile_context>

<pallas_src>
import jax
import jax.numpy as jnp
from jax.experimental import pallas as pl
from jax.experimental.pallas import tpu as pltpu

ALPHA = 0.8
GAMMA = 2.0

_TARGET_BLOCK_BYTES = 1 << 20   # ~1 MiB per input block (f32 compute size)


def _plan_tiles(hw, c, max_block_rows=None):
    """Pick sublane rows per tile (tile_s) and padded total row count."""
    rows = -(-hw // 128)
    bytes_per_row = c * 128 * 4
    cap = max(8, (_TARGET_BLOCK_BYTES // bytes_per_row) // 8 * 8)
    if max_block_rows is not None:
        cap = min(cap, max(8, (max_block_rows // 8) * 8))
    if rows <= cap:
        return rows, rows          # full-extent block: legal even if not 8-mult
    tile_s = cap
    rows_pad = -(-rows // tile_s) * tile_s
    return tile_s, rows_pad


def _make_kernel(c, tile_s, hw, need_mask):
    def kernel(x_ref, t_ref, o_ref):
        # x_ref, t_ref: (C, S, 128); o_ref: (1, 128) per-(batch, tile) partial.
        xs = [x_ref[ci].astype(jnp.float32) for ci in range(c)]

        # Channel max / sum-of-exp: elementwise folds over the static C axis.
        # TODO(synk): for very large C switch to a fori_loop / 3-D reduction to
        # keep trace size bounded.
        m = xs[0]
        for ci in range(1, c):
            m = jnp.maximum(m, xs[ci])
        es = [jnp.exp(xc - m) for xc in xs]            # one exp / element (EUP)
        s = es[0]
        for ci in range(1, c):
            s = s + es[ci]
        ls = jnp.log(s)                                # per-column log
        lse = m + ls

        # Per-channel BCE. PyTorch BCE clamps log terms at -100.
        #   log p    = x - lse
        #   log(1-p) = log(s - e) - log(s)   (no divide, no reciprocal)
        # Accumulate -(BCE); the sign is applied once in the wrapper.
        acc = jnp.zeros((tile_s, 128), jnp.float32)
        for ci in range(c):
            t = t_ref[ci].astype(jnp.float32)
            log_p = jnp.maximum(xs[ci] - lse, -100.0)
            log_1mp = jnp.maximum(jnp.log(s - es[ci]) - ls, -100.0)
            acc = acc + (log_1mp + t * (log_p - log_1mp))

        if need_mask:
            i = pl.program_id(1)
            row = jax.lax.broadcasted_iota(jnp.int32, (tile_s, 128), 0)
            lane = jax.lax.broadcasted_iota(jnp.int32, (tile_s, 128), 1)
            flat = (i * tile_s + row) * 128 + lane
            acc = jnp.where(flat < hw, acc, 0.0)

        # Sublane reduce only; the cross-lane / cross-tile sum happens in the
        # tiny JAX epilogue.
        o_ref[...] = jnp.sum(acc, axis=0, keepdims=True)

    return kernel


def focal_loss(inputs, targets, alpha=ALPHA, gamma=GAMMA, max_block_rows=None):
    """inputs, targets: NCHW arrays of identical shape. Returns scalar f32 loss."""
    n, c, h, w = inputs.shape
    hw = h * w
    tile_s, rows_pad = _plan_tiles(hw, c, max_block_rows)
    hw_pad = rows_pad * 128
    num_tiles = rows_pad // tile_s
    need_mask = hw_pad != hw

    # Free, contiguous reshapes (no transpose => no extra HBM pass).
    x = inputs.reshape(n, c, hw)
    t = targets.reshape(n, c, hw)
    if need_mask:
        # TODO(synk): padding costs one extra HBM pass; a BoundedSlice-based
        # ragged tail would avoid it.
        pad = ((0, 0), (0, 0), (0, hw_pad - hw))
        x = jnp.pad(x, pad)
        t = jnp.pad(t, pad)
    x = x.reshape(n, c, rows_pad, 128)
    t = t.reshape(n, c, rows_pad, 128)

    block_bytes = c * tile_s * 128 * 4
    est_vmem = 8 * block_bytes + (1 << 16)   # 2 inputs x 2 bufs + f32 temporaries
    vmem_limit = None
    if est_vmem > (12 << 20):
        vmem_limit = int(min(est_vmem + (4 << 20), 64 << 20))

    kernel = _make_kernel(c, tile_s, hw, need_mask)

    partials = pl.pallas_call(
        kernel,
        out_shape=jax.ShapeDtypeStruct((n, num_tiles, 1, 128), jnp.float32),
        grid_spec=pltpu.PrefetchScalarGridSpec(
            num_scalar_prefetch=0,
            grid=(n, num_tiles),
            in_specs=[
                pl.BlockSpec((None, c, tile_s, 128), lambda b, i: (b, 0, i, 0)),
                pl.BlockSpec((None, c, tile_s, 128), lambda b, i: (b, 0, i, 0)),
            ],
            out_specs=pl.BlockSpec((None, None, 1, 128), lambda b, i: (b, i, 0, 0)),
        ),
        compiler_params=pltpu.CompilerParams(
            dimension_semantics=("parallel", "parallel"),
            vmem_limit_bytes=vmem_limit,
        ),
    )(x, t)

    # Tiny scalar epilogue: global mean (apply the minus sign once) + focal.
    bce = -jnp.sum(partials) / jnp.float32(n * c * hw)
    bce_exp = jnp.exp(-bce)
    return alpha * (1.0 - bce_exp) ** gamma * bce


def focal_loss_ref(inputs, targets, alpha=ALPHA, gamma=GAMMA):
    p = jax.nn.softmax(inputs.astype(jnp.float32), axis=1).reshape(-1)
    t = targets.astype(jnp.float32).reshape(-1)
    log_p = jnp.maximum(jnp.log(p), -100.0)
    log_1mp = jnp.maximum(jnp.log(1.0 - p), -100.0)
    bce = jnp.mean(-(t * log_p + (1.0 - t) * log_1mp))
    bce_exp = jnp.exp(-bce)
    return alpha * (1.0 - bce_exp) ** gamma * bce


if __name__ == "__main__":
    key = jax.random.PRNGKey(0)
    k1, k2, k3, k4, k5, k6 = jax.random.split(key, 6)

    # 1) Primary demo shape (single tile, no padding).
    inputs = jax.random.normal(k1, (2, 4, 16, 16), dtype=jnp.float32)
    targets = jax.random.uniform(k2, (2, 4, 16, 16), dtype=jnp.float32)
    out = jax.block_until_ready(focal_loss(inputs, targets))
    ref = focal_loss_ref(inputs, targets)
    assert jnp.allclose(out, ref, rtol=5e-5, atol=1e-5), (out, ref)

    # 2) Multi-tile path along the HW axis (both grid axes active).
    inputs2 = jax.random.normal(k3, (2, 4, 64, 64), dtype=jnp.float32)
    targets2 = jax.random.uniform(k4, (2, 4, 64, 64), dtype=jnp.float32)
    out2 = jax.block_until_ready(focal_loss(inputs2, targets2, max_block_rows=8))
    ref2 = focal_loss_ref(inputs2, targets2)
    assert jnp.allclose(out2, ref2, rtol=5e-5, atol=1e-5), (out2, ref2)

    # 3) Ragged HW (pad + in-kernel mask).
    inputs3 = jax.random.normal(k5, (2, 4, 17, 15), dtype=jnp.float32)
    targets3 = jax.random.uniform(k6, (2, 4, 17, 15), dtype=jnp.float32)
    out3 = jax.block_until_ready(focal_loss(inputs3, targets3))
    ref3 = focal_loss_ref(inputs3, targets3)
    assert jnp.allclose(out3, ref3, rtol=5e-5, atol=1e-5), (out3, ref3)

    print("KERNEL_OK")
</pallas_src>

<mosaic_0001>
module attributes {stable_mosaic.version = 11 : i64} {
  func.func @kernel(%arg0: i32, %arg1: i32, %arg2: memref<1x4x2x128xf32, #tpu.memory_space<vmem>>, %arg3: memref<1x4x2x128xf32, #tpu.memory_space<vmem>>, %arg4: memref<1x1x1x128xf32, #tpu.memory_space<vmem>>) attributes {dimension_semantics = [#tpu.dimension_semantics<parallel>, #tpu.dimension_semantics<parallel>], iteration_bounds = array<i64: 2, 1>, scalar_prefetch = 0 : i64, scratch_operands = 0 : i64, tpu.core_type = #tpu.core_type<tc>, window_params = [{transform_indices = @transform_0, window_bounds = array<i64: 1, 4, 2, 128>}, {transform_indices = @transform_1, window_bounds = array<i64: 1, 4, 2, 128>}, {transform_indices = @transform_2, window_bounds = array<i64: 1, 1, 1, 128>}]} {
    %c0 = arith.constant 0 : index
    %c0_0 = arith.constant 0 : index
    %c0_1 = arith.constant 0 : index
    %c0_2 = arith.constant 0 : index
    %0 = vector.load %arg2[%c0, %c0_0, %c0_1, %c0_2] : memref<1x4x2x128xf32, #tpu.memory_space<vmem>>, vector<1x1x2x128xf32>
    %1 = vector.shape_cast %0 : vector<1x1x2x128xf32> to vector<2x128xf32>
    %c0_3 = arith.constant 0 : index
    %c1 = arith.constant 1 : index
    %c0_4 = arith.constant 0 : index
    %c0_5 = arith.constant 0 : index
    %2 = vector.load %arg2[%c0_3, %c1, %c0_4, %c0_5] : memref<1x4x2x128xf32, #tpu.memory_space<vmem>>, vector<1x1x2x128xf32>
    %3 = vector.shape_cast %2 : vector<1x1x2x128xf32> to vector<2x128xf32>
    %c0_6 = arith.constant 0 : index
    %c2 = arith.constant 2 : index
    %c0_7 = arith.constant 0 : index
    %c0_8 = arith.constant 0 : index
    %4 = vector.load %arg2[%c0_6, %c2, %c0_7, %c0_8] : memref<1x4x2x128xf32, #tpu.memory_space<vmem>>, vector<1x1x2x128xf32>
    %5 = vector.shape_cast %4 : vector<1x1x2x128xf32> to vector<2x128xf32>
    %c0_9 = arith.constant 0 : index
    %c3 = arith.constant 3 : index
    %c0_10 = arith.constant 0 : index
    %c0_11 = arith.constant 0 : index
    %6 = vector.load %arg2[%c0_9, %c3, %c0_10, %c0_11] : memref<1x4x2x128xf32, #tpu.memory_space<vmem>>, vector<1x1x2x128xf32>
    %7 = vector.shape_cast %6 : vector<1x1x2x128xf32> to vector<2x128xf32>
    %8 = arith.maximumf %1, %3 : vector<2x128xf32>
    %9 = arith.maximumf %8, %5 : vector<2x128xf32>
    %10 = arith.maximumf %9, %7 : vector<2x128xf32>
    %11 = arith.subf %1, %10 : vector<2x128xf32>
    %12 = math.exp %11 : vector<2x128xf32>
    %13 = arith.subf %3, %10 : vector<2x128xf32>
    %14 = math.exp %13 : vector<2x128xf32>
    %15 = arith.subf %5, %10 : vector<2x128xf32>
    %16 = math.exp %15 : vector<2x128xf32>
    %17 = arith.subf %7, %10 : vector<2x128xf32>
    %18 = math.exp %17 : vector<2x128xf32>
    %19 = arith.addf %12, %14 : vector<2x128xf32>
    %20 = arith.addf %19, %16 : vector<2x128xf32>
    %21 = arith.addf %20, %18 : vector<2x128xf32>
    %22 = math.log %21 : vector<2x128xf32>
    %23 = arith.addf %10, %22 : vector<2x128xf32>
    %cst = arith.constant 0.000000e+00 : f32
    %24 = vector.broadcast %cst : f32 to vector<2x128xf32>
    %c0_12 = arith.constant 0 : index
    %c0_13 = arith.constant 0 : index
    %c0_14 = arith.constant 0 : index
    %c0_15 = arith.constant 0 : index
    %25 = vector.load %arg3[%c0_12, %c0_13, %c0_14, %c0_15] : memref<1x4x2x128xf32, #tpu.memory_space<vmem>>, vector<1x1x2x128xf32>
    %26 = vector.shape_cast %25 : vector<1x1x2x128xf32> to vector<2x128xf32>
    %27 = arith.subf %1, %23 : vector<2x128xf32>
    %cst_16 = arith.constant -1.000000e+02 : f32
    %28 = vector.broadcast %cst_16 : f32 to vector<2x128xf32>
    %29 = arith.maximumf %27, %28 : vector<2x128xf32>
    %30 = arith.subf %21, %12 : vector<2x128xf32>
    %31 = math.log %30 : vector<2x128xf32>
    %32 = arith.subf %31, %22 : vector<2x128xf32>
    %cst_17 = arith.constant -1.000000e+02 : f32
    %33 = vector.broadcast %cst_17 : f32 to vector<2x128xf32>
    %34 = arith.maximumf %32, %33 : vector<2x128xf32>
    %35 = arith.subf %29, %34 : vector<2x128xf32>
    %36 = arith.mulf %26, %35 : vector<2x128xf32>
    %37 = arith.addf %34, %36 : vector<2x128xf32>
    %38 = arith.addf %24, %37 : vector<2x128xf32>
    %c0_18 = arith.constant 0 : index
    %c1_19 = arith.constant 1 : index
    %c0_20 = arith.constant 0 : index
    %c0_21 = arith.constant 0 : index
    %39 = vector.load %arg3[%c0_18, %c1_19, %c0_20, %c0_21] : memref<1x4x2x128xf32, #tpu.memory_space<vmem>>, vector<1x1x2x128xf32>
    %40 = vector.shape_cast %39 : vector<1x1x2x128xf32> to vector<2x128xf32>
    %41 = arith.subf %3, %23 : vector<2x128xf32>
    %cst_22 = arith.constant -1.000000e+02 : f32
    %42 = vector.broadcast %cst_22 : f32 to vector<2x128xf32>
    %43 = arith.maximumf %41, %42 : vector<2x128xf32>
    %44 = arith.subf %21, %14 : vector<2x128xf32>
    %45 = math.log %44 : vector<2x128xf32>
    %46 = arith.subf %45, %22 : vector<2x128xf32>
    %cst_23 = arith.constant -1.000000e+02 : f32
    %47 = vector.broadcast %cst_23 : f32 to vector<2x128xf32>
    %48 = arith.maximumf %46, %47 : vector<2x128xf32>
    %49 = arith.subf %43, %48 : vector<2x128xf32>
    %50 = arith.mulf %40, %49 : vector<2x128xf32>
    %51 = arith.addf %48, %50 : vector<2x128xf32>
    %52 = arith.addf %38, %51 : vector<2x128xf32>
    %c0_24 = arith.constant 0 : index
    %c2_25 = arith.constant 2 : index
    %c0_26 = arith.constant 0 : index
    %c0_27 = arith.constant 0 : index
    %53 = vector.load %arg3[%c0_24, %c2_25, %c0_26, %c0_27] : memref<1x4x2x128xf32, #tpu.memory_space<vmem>>, vector<1x1x2x128xf32>
    %54 = vector.shape_cast %53 : vector<1x1x2x128xf32> to vector<2x128xf32>
    %55 = arith.subf %5, %23 : vector<2x128xf32>
    %cst_28 = arith.constant -1.000000e+02 : f32
    %56 = vector.broadcast %cst_28 : f32 to vector<2x128xf32>
    %57 = arith.maximumf %55, %56 : vector<2x128xf32>
    %58 = arith.subf %21, %16 : vector<2x128xf32>
    %59 = math.log %58 : vector<2x128xf32>
    %60 = arith.subf %59, %22 : vector<2x128xf32>
    %cst_29 = arith.constant -1.000000e+02 : f32
    %61 = vector.broadcast %cst_29 : f32 to vector<2x128xf32>
    %62 = arith.maximumf %60, %61 : vector<2x128xf32>
    %63 = arith.subf %57, %62 : vector<2x128xf32>
    %64 = arith.mulf %54, %63 : vector<2x128xf32>
    %65 = arith.addf %62, %64 : vector<2x128xf32>
    %66 = arith.addf %52, %65 : vector<2x128xf32>
    %c0_30 = arith.constant 0 : index
    %c3_31 = arith.constant 3 : index
    %c0_32 = arith.constant 0 : index
    %c0_33 = arith.constant 0 : index
    %67 = vector.load %arg3[%c0_30, %c3_31, %c0_32, %c0_33] : memref<1x4x2x128xf32, #tpu.memory_space<vmem>>, vector<1x1x2x128xf32>
    %68 = vector.shape_cast %67 : vector<1x1x2x128xf32> to vector<2x128xf32>
    %69 = arith.subf %7, %23 : vector<2x128xf32>
    %cst_34 = arith.constant -1.000000e+02 : f32
    %70 = vector.broadcast %cst_34 : f32 to vector<2x128xf32>
    %71 = arith.maximumf %69, %70 : vector<2x128xf32>
    %72 = arith.subf %21, %18 : vector<2x128xf32>
    %73 = math.log %72 : vector<2x128xf32>
    %74 = arith.subf %73, %22 : vector<2x128xf32>
    %cst_35 = arith.constant -1.000000e+02 : f32
    %75 = vector.broadcast %cst_35 : f32 to vector<2x128xf32>
    %76 = arith.maximumf %74, %75 : vector<2x128xf32>
    %77 = arith.subf %71, %76 : vector<2x128xf32>
    %78 = arith.mulf %68, %77 : vector<2x128xf32>
    %79 = arith.addf %76, %78 : vector<2x128xf32>
    %80 = arith.addf %66, %79 : vector<2x128xf32>
    %cst_36 = arith.constant dense<0.000000e+00> : vector<128xf32>
    %81 = vector.multi_reduction <add>, %80, %cst_36 [0] : vector<2x128xf32> to vector<128xf32>
    %82 = vector.shape_cast %81 : vector<128xf32> to vector<1x128xf32>
    %c0_37 = arith.constant 0 : index
    %c0_38 = arith.constant 0 : index
    %c0_39 = arith.constant 0 : index
    %c0_40 = arith.constant 0 : index
    %83 = vector.load %arg4[%c0_37, %c0_38, %c0_39, %c0_40] : memref<1x1x1x128xf32, #tpu.memory_space<vmem>>, vector<1x1x1x128xf32>
    %84 = vector.shape_cast %83 : vector<1x1x1x128xf32> to vector<1x128xf32>
    %85 = vector.shape_cast %82 : vector<1x128xf32> to vector<1x1x1x128xf32>
    tpu.vector_store %arg4[%c0_37, %c0_38, %c0_39, %c0_40], %85 {strides = array<i32>} : memref<1x1x1x128xf32, #tpu.memory_space<vmem>>, vector<1x1x1x128xf32>,
    return
  }
  func.func @transform_0(%arg0: i32, %arg1: i32) -> (i32, i32, i32, i32) {
    %c0_i32 = arith.constant 0 : i32
    %c0_i32_0 = arith.constant 0 : i32
    %c0_i32_1 = arith.constant 0 : i32
    return %arg0, %c0_i32, %arg1, %c0_i32_0 : i32, i32, i32, i32
  }
  func.func @transform_1(%arg0: i32, %arg1: i32) -> (i32, i32, i32, i32) {
    %c0_i32 = arith.constant 0 : i32
    %c0_i32_0 = arith.constant 0 : i32
    %c0_i32_1 = arith.constant 0 : i32
    return %arg0, %c0_i32, %arg1, %c0_i32_0 : i32, i32, i32, i32
  }
  func.func @transform_2(%arg0: i32, %arg1: i32) -> (i32, i32, i32, i32) {
    %c0_i32 = arith.constant 0 : i32
    %c0_i32_0 = arith.constant 0 : i32
    %c0_i32_1 = arith.constant 0 : i32
    return %arg0, %arg1, %c0_i32, %c0_i32_0 : i32, i32, i32, i32
  }
}

</mosaic_0001>

<bundles_post_ra>
// kernel: tpu_custom_call.1
= control target key start
LH: loop header
LB: loop body
LE: loop exit
PB: predicated region body
PF: predicated region fallthrough
CT: control target
= control target key end

     0   :  { %7 = vsyncpa [#allocation3], 0  ;;  %s945_s0 = inlined_call_operand.hbm [shape: f32[2,4,2,128], index: 0, kind: input, shape index: {}]   ;;  %s946_s1 = inlined_call_operand.hbm [shape: f32[2,4,2,128], index: 1, kind: input, shape index: {}]   ;;  %s947_s2 = inlined_call_operand.hbm [shape: f32[2,1,1,128], index: 2, kind: output, shape index: {}]  }
   0x1   :  { %9 = vsyncpa [#allocation3 + $0x1], 0 }
   0x2   :  { %10 = vsyncpa [#allocation6], 0 }
   0x3   :  { %12 = vsyncpa [#allocation6 + $0x1], 0 }
   0x4   :  { %13 = vsyncpa [#allocation4], 0 }
   0x5   :  { %15 = vsyncpa [#allocation4 + $0x1], 0  ;;  %s704_s9 = smov 0   ;;  %s706_s10 = smov 0  }
   0x6   :  { %s708_s11 = smov 0   ;;  %s710_s12 = smov 0  }
   0x7   :  { %s712_s13 = smov 0   ;;  %s714_s14 = smov 0  }
   0x8 LB: > { %s425_s15 = sadd.s32 4294967295, %s682_s14   ;;  %s426_s16 = sadd.s32 4294967294, %s682_s14   ;;  %s682_s14 = sphi %s714_s14, %s21_s14   ;;  %s678_s13 = sphi %s712_s13, %s965_s13   ;;  %s674_s12 = sphi %s710_s12, %s964_s12   ;;  %s670_s11 = sphi %s708_s11, %s963_s11   ;;  %s666_s10 = sphi %s706_s10, %s962_s10   ;;  %s662_s9 = sphi %s704_s9, %s961_s9  }
   0x9   : > { %s33_s17 = sadd.s32 1, %s678_s13  ;;  %s42_s18 = sadd.s32 1, %s670_s11 }
   0xa   : > { %p35_p0 = scmp.ge.s32.totalorder %s33_s17, 2  ;;  %p49_p1 = scmp.ne.s32.totalorder %s670_s11, %s666_s10 }
   0xb   : > { %p50_p2 = scmp.eq.s32.totalorder %s682_s14, 0  ;;  %p55_p3 = scmp.ne.s32.totalorder %s666_s10, %s662_s9 }
   0xc   : > { %s967_s17 = smov (%p35_p0, %s33_s17), 0  ;;  %p56_p5 = scmp.eq.s32.totalorder %s425_s15, 0 }
   0xd   : > { %p745_p4 = por %p50_p2, %p49_p1  ;;  %s37_s20 = ssub.s32 %s678_s13, %s967_s17 }
   0xe   : > { %p109_p6 = scmp.eq.s32.totalorder %s425_s15, 1  ;;  %p40_p7 = scmp.eq.s32.totalorder %s37_s20, 0 }
   0xf   : > { %p751_p8 = por %p56_p5, %p55_p3  ;;  %p115_p10 = scmp.eq.s32.totalorder %s426_s16, 1 }
  0x10   : > { %p755_p9 = por %p109_p6, %p49_p1  ;;  %p466_p13 = scmp.lt.s32.totalorder %s682_s14, 2 }
  0x11   : > { %s951_s21 = scalar_select %p751_p8, 1, 0 }
  0x12   : > { %s952_s22 = scalar_select %p755_p9, 1, 0 }
  0x13   : > { %s760_s23 = scalar_select %p40_p7, %s670_s11, %s42_s18  }
  0x14   : > { %p762_p11 = por %p115_p10, %p55_p3  ;;  %s769_s25 = sand.u32 1, %s670_s11  }
  0x15   : > { %s429_s26 = sshll.u32 %s769_s25, 3  ;;  %s447_s27 = sshll.u32 %s678_s13, 7 }
  0x16   : > { %s953_s24 = scalar_select %p762_p11, 1, 0 }
  0x17   : > { %s778_s30 = scalar_lea.hbm %s945_s0, %s447_s27  ;;  %s139_s3 = scalar_lea.vmem [#allocation2], %s429_s26 }
  0x18   : > { %s147_s4 = sshll.u32 %s139_s3, 4  ;;  %p786_p0 = pnand %p466_p13, %p745_p4  ;;  %s782_s4 = int_to_ptr.vmem [resolvable:$true] %s147_s4 }
  0x19   : > { %s136_s6 = scalar_lea.sflag [#allocation3], %s769_s25  ;;  %s536_s7 = scalar_lea.hbm %s778_s30, 128 }
  0x1a   : > { %p537_p2 = scmp.ne.s32.totalorder %s778_s30, %s536_s7  ;;  %p538_p3 = pneg %p786_p0 }
  0x1b   : > { %s541_s16 = scalar_lea.hbm %s945_s0, 256  ;;  %p542_p4 = scmp.lt.u32.totalorder %s778_s30, %s945_s0 }
  0x1c   : > { %p539_p5 = pnand %p538_p3, %p537_p2  ;;  %p543_p7 = scmp.lt.u32.totalorder %s541_s16, %s536_s7 }
  0x1d   : > { %p545_p13 = scmp.lt.u32.totalorder %s536_s7, %s778_s30 }
  0x1e   : > { %p540_p6 = pneg %p539_p5  ;;  %p544_p10 = por %p543_p7, %p542_p4 }
  0x20   : > { %p546_p12 = por %p545_p13, %p544_p10 }
  0x22   : > { %p547_p1 = pnand %p546_p12, %p540_p6 }
  0x24   : > { %550 = shalt.err (!%p547_p1)
}
  0x25   : > { %s551_s20 = scalar_lea.vmem %s782_s4, 128  ;;  %s684_s28 = smov [#allocation2]  }
  0x26   : > { %p552_p2 = scmp.ne.s32.totalorder %s782_s4, %s551_s20  ;;  %s556_s29 = sshll.u32 %s684_s28, 4  ;;  %s557_s29 = int_to_ptr.vmem [resolvable:$false] %s556_s29 }
  0x27   : > { %s558_s3 = scalar_lea.vmem %s557_s29, 256  ;;  %p559_p9 = scmp.lt.s32.totalorder %s782_s4, %s557_s29 }
  0x28   : > { %p554_p5 = pnand %p552_p2, %p538_p3  ;;  %p560_p4 = scmp.lt.s32.totalorder %s558_s3, %s551_s20 }
  0x2a   : > { %p555_p11 = pneg %p554_p5  ;;  %p561_p7 = por %p560_p4, %p559_p9 }
  0x2c   : > { %p562_p10 = pnand %p561_p7, %p555_p11 }
  0x2e   : > { %565 = shalt.err (!%p562_p10)
}
  0x2f   : > { %s685_s7 = smov 32   ;;  %s686_s8 = smov 2  }
  0x30   : > { %458 = dma.hbm_to_vmem [thread:$0]  (!%p786_p0), %s778_s30, 128, %s782_s4, %s136_s6, %s685_s7, %s685_s7, %s686_s8  }
  0x31   : > { %p177_p9 = scmp.lt.s32.totalorder %s682_s14, 3  ;;  %s828_s18 = scalar_lea.hbm %s946_s1, %s447_s27 }
  0x32   : > { %p955_p11 = scmp.ge.s32.totalorder %s682_s14, 1  ;;  %s161_s20 = scalar_lea.vmem [#allocation5], %s429_s26 }
  0x33   : > { %s169_s28 = sshll.u32 %s161_s20, 4  ;;  %s158_s30 = scalar_lea.sflag [#allocation6], %s769_s25  ;;  %s838_s28 = int_to_ptr.vmem [resolvable:$true] %s169_s28 }
  0x34   : > { %p832_p12 = pnand %p955_p11, %p177_p9  ;;  %s566_s4 = scalar_lea.hbm %s828_s18, 128 }
  0x35   : > { %p567_p1 = scmp.ne.s32.totalorder %s828_s18, %s566_s4  ;;  %s571_s29 = scalar_lea.hbm %s946_s1, 256 }
  0x36   : > { %p572_p2 = scmp.lt.u32.totalorder %s828_s18, %s946_s1  ;;  %p573_p5 = scmp.lt.u32.totalorder %s571_s29, %s566_s4 }
  0x37   : > { %p569_p6 = pnand %p567_p1, %p538_p3  ;;  %p575_p7 = scmp.lt.u32.totalorder %s566_s4, %s828_s18 }
  0x38   : > { %p574_p4 = por %p573_p5, %p572_p2 }
  0x39   : > { %p570_p13 = pneg %p569_p6 }
  0x3a   : > { %p576_p10 = por %p575_p7, %p574_p4 }
  0x3c   : > { %p577_p9 = pnand %p576_p10, %p570_p13 }
  0x3e   : > { %580 = shalt.err (!%p577_p9)
}
  0x3f   : > { %s581_s26 = scalar_lea.vmem %s838_s28, 128  ;;  %s687_s16 = smov [#allocation5]  }
  0x40   : > { %p582_p11 = scmp.ne.s32.totalorder %s838_s28, %s581_s26  ;;  %s586_s20 = sshll.u32 %s687_s16, 4  ;;  %s587_s20 = int_to_ptr.vmem [resolvable:$false] %s586_s20 }
  0x41   : > { %s588_s27 = scalar_lea.vmem %s587_s20, 256  ;;  %p589_p8 = scmp.lt.s32.totalorder %s838_s28, %s587_s20 }
  0x42   : > { %p584_p1 = pnand %p582_p11, %p538_p3  ;;  %p590_p2 = scmp.lt.s32.totalorder %s588_s27, %s581_s26 }
  0x44   : > { %p585_p6 = pneg %p584_p1  ;;  %p591_p5 = por %p590_p2, %p589_p8 }
  0x46   : > { %p592_p4 = pnand %p591_p5, %p585_p6 }
  0x48   : > { %595 = shalt.err (!%p592_p4)
}
  0x49   : > { %461 = dma.hbm_to_vmem [thread:$0]  (!%p786_p0), %s828_s18, 128, %s838_s28, %s158_s30, %s685_s7, %s685_s7, %s686_s8  }
  0x4a   : > { %181 = sbr.rel (%p832_p12) target bundleno = 172 (0xac), region = 28  ;;  %s872_s4 = sand.u32 (!%p832_p12), 1, %s666_s10  }
  0x4b   : > { %s436_s6 = sshll.u32 (!%p832_p12), %s872_s4, 3  ;;  %s184_s29 = scalar_lea.sflag (!%p832_p12), [#allocation3], %s872_s4 }
  0x4c   : > { %s187_s5 = scalar_lea.vmem (!%p832_p12), [#allocation2], %s436_s6  ;;  %p957_p8 = scmp.ne.s32.totalorder (!%p832_p12), %s951_s21, 0 }
  0x51   : > { %649 = dma.done.wait (%p957_p8), %s184_s29, 128  }
  0x52   : > { %651 = vsyncadd (%p957_p8), %s184_s29, 4294967168  ;;  %s193_s25 = scalar_lea.sflag [#allocation6], %s872_s4  ;;  %s881_s7 = scalar_lea.vmem [#allocation5], %s436_s6 }
  0x53   : > { %653 = dma.done.wait (%p957_p8), %s193_s25, 128  }
  0x54   : > { %655 = vsyncadd (%p957_p8), %s193_s25, 4294967168  ;;  %v221_v0 = vld [vmem:[%s187_s5] sm:$0x3]  ;;  %v438_v1 = vld [vmem:[%s187_s5 + $0x2] sm:$0x3]  ;;  %vm300_vm0 = vcmask 1041408  }
  0x55   : > { %v439_v2 = vld [vmem:[%s187_s5 + $0x4] sm:$0x3]  ;;  %v228_v3 = vmax.f32 %v221_v0, %v438_v1  ;;  %v440_v4 = vld [vmem:[%s187_s5 + $0x6] sm:$0x3]  ;;  %v249_v47 = vld [vmem:[%s881_s7] sm:$0x3] }
  0x56   : > { %v441_v53 = vld [vmem:[%s881_s7 + $0x2] sm:$0x3]  ;;  %v442_v58 = vld [vmem:[%s881_s7 + $0x4] sm:$0x3]  ;;  %v443_v59 = vld [vmem:[%s881_s7 + $0x6] sm:$0x3] }
  0x57   : > { %v229_v5 = vmax.f32 %v228_v3, %v439_v2  ;;  %s220_s21 = scalar_lea.vmem [#allocation7], %s872_s4  ;;  %s444_s18 = sshll.u32 %s674_s12, 4 }
  0x58   : > { %s323_s8 = sshll.u32 %s220_s21, 4  ;;  %s898_s30 = scalar_lea.hbm %s947_s2, %s444_s18  ;;  %s893_s8 = int_to_ptr.vmem [resolvable:$true] %s323_s8 }
  0x59   : > { %v230_v6 = vmax.f32 %v229_v5, %v440_v4  ;;  %s310_s3 = scalar_lea.sflag [#allocation4], %s872_s4  ;;  %s596_s15 = scalar_lea.vmem %s893_s8, 16 }
  0x5a   : > { %p597_p0 = scmp.ne.s32.totalorder %s893_s8, %s596_s15  ;;  %p958_p3 = scmp.ne.s32.totalorder %s952_s22, 0 }
  0x5b   : > { %v231_v7 = vsub.f32 %v221_v0, %v230_v6  ;;  %v234_v8 = vsub.f32 %v438_v1, %v230_v6  ;;  %v237_v9 = vsub.f32 %v439_v2, %v230_v6  ;;  %v240_v10 = vsub.f32 %v440_v4, %v230_v6  ;;  %s688_s12 = smov [#allocation7]  }
  0x5c   : > { %p598_p12 = pnand %p597_p0, %p958_p3  ;;  %s600_s26 = sshll.u32 %s688_s12, 4  ;;  %s601_s26 = int_to_ptr.vmem [resolvable:$false] %s600_s26 }
  0x5d   : > { %v232_v11 = vmul.f32 1.442695, %v231_v7  ;;  %v235_v12 = vmul.f32 1.442695, %v234_v8  ;;  %v238_v13 = vmul.f32 1.442695, %v237_v9  ;;  %p603_p7 = scmp.lt.s32.totalorder %s893_s8, %s601_s26 }
  0x5e   : > { %v241_v14 = vmul.f32 1.442695, %v240_v10  ;;  %p599_p13 = pneg %p598_p12  ;;  %s602_s16 = scalar_lea.vmem %s601_s26, 32 }
  0x5f   : > { %518 = vpow2.f32 %v232_v11  ;;  %p604_p10 = scmp.lt.s32.totalorder %s602_s16, %s596_s15 }
  0x60   : > { %520 = vpow2.f32 %v235_v12 }
  0x61   : > { %522 = vpow2.f32 %v238_v13  ;;  %p605_p9 = por %p604_p10, %p603_p7 }
  0x62   : > { %524 = vpow2.f32 %v241_v14 }
  0x63   : > { %p606_p11 = pnand %p605_p9, %p599_p13 }
  0x69   : > { %v519_v15 = vpop.eup %518 }
  0x6a   : > { %v521_v16 = vpop.eup %520 }
  0x6b   : > { %v523_v17 = vpop.eup %522  ;;  %v243_v18 = vadd.f32 %v521_v16, %v519_v15 }
  0x6c   : > { %v525_v19 = vpop.eup %524 }
  0x6d   : > { %v244_v20 = vadd.f32 %v523_v17, %v243_v18 }
  0x6f   : > { %v245_v21 = vadd.f32 %v525_v19, %v244_v20 }
  0x71   : > { %526 = vlog2.f32 %v245_v21  ;;  %v252_v22 = vsub.f32 %v245_v21, %v519_v15  ;;  %v265_v23 = vsub.f32 %v245_v21, %v521_v16  ;;  %v278_v24 = vsub.f32 %v245_v21, %v523_v17 }
  0x72   : > { %v291_v25 = vsub.f32 %v245_v21, %v525_v19 }
  0x73   : > { %528 = vlog2.f32 %v252_v22 }
  0x74   : > { %530 = vlog2.f32 %v265_v23 }
  0x75   : > { %532 = vlog2.f32 %v278_v24 }
  0x76   : > { %534 = vlog2.f32 %v291_v25 }
  0x7b   : > { %v527_v26 = vpop.eup %526 }
  0x7c   : > { %v247_v27 = vmul.f32 0.6931472, %v527_v26 }
  0x7d   : > { %v529_v28 = vpop.eup %528 }
  0x7e   : > { %v531_v29 = vpop.eup %530  ;;  %v248_v30 = vadd.f32 %v247_v27, %v230_v6  ;;  %v254_v31 = vmul.f32 0.6931472, %v529_v28 }
  0x7f   : > { %v533_v32 = vpop.eup %532  ;;  %v267_v33 = vmul.f32 0.6931472, %v531_v29 }
  0x80   : > { %v535_v34 = vpop.eup %534  ;;  %v250_v35 = vsub.f32 %v221_v0, %v248_v30  ;;  %v255_v36 = vsub.f32 %v254_v31, %v247_v27  ;;  %v263_v37 = vsub.f32 %v438_v1, %v248_v30  ;;  %v276_v38 = vsub.f32 %v439_v2, %v248_v30 }
  0x81   : > { %v268_v39 = vsub.f32 %v267_v33, %v247_v27  ;;  %v280_v40 = vmul.f32 0.6931472, %v533_v32  ;;  %v289_v41 = vsub.f32 %v440_v4, %v248_v30  ;;  %v293_v42 = vmul.f32 0.6931472, %v535_v34 }
  0x82   : > { %v251_v43 = vmax.f32 %v250_v35, -100.0  ;;  %v256_v44 = vmax.f32 %v255_v36, -100.0  ;;  %v264_v45 = vmax.f32 %v263_v37, -100.0  ;;  %v277_v46 = vmax.f32 %v276_v38, -100.0 }
  0x83   : > { %v269_v48 = vmax.f32 %v268_v39, -100.0  ;;  %v281_v49 = vsub.f32 %v280_v40, %v247_v27  ;;  %v290_v50 = vmax.f32 %v289_v41, -100.0  ;;  %v294_v51 = vsub.f32 %v293_v42, %v247_v27 }
  0x84   : > { %v257_v52 = vsub.f32 %v251_v43, %v256_v44 }
  0x85   : > { %v270_v54 = vsub.f32 %v264_v45, %v269_v48  ;;  %v282_v55 = vmax.f32 %v281_v49, -100.0  ;;  %v295_v56 = vmax.f32 %v294_v51, -100.0 }
  0x86   : > { %v258_v57 = vmul.f32 %v257_v52, %v249_v47 }
  0x87   : > { %v271_v60 = vmul.f32 %v441_v53, %v270_v54  ;;  %v283_v61 = vsub.f32 %v277_v46, %v282_v55  ;;  %v296_v62 = vsub.f32 %v290_v50, %v295_v56 }
  0x88   : > { %v259_v63 = vadd.f32 %v258_v57, %v256_v44 }
  0x89   : > { %v272_v0 = vadd.f32 %v271_v60, %v269_v48  ;;  %v284_v1 = vmul.f32 %v442_v58, %v283_v61  ;;  %v297_v2 = vmul.f32 %v443_v59, %v296_v62 }
  0x8b   : > { %v273_v3 = vadd.f32 %v272_v0, %v259_v63  ;;  %v285_v4 = vadd.f32 %v284_v1, %v282_v55  ;;  %v298_v5 = vadd.f32 %v297_v2, %v295_v56 }
  0x8d   : > { %v286_v6 = vadd.f32 %v285_v4, %v273_v3 }
  0x8f   : > { %v299_v7 = vadd.f32 %v298_v5, %v286_v6 }
  0x91   : > { %v301_v8 = vsel %vm300_vm0, %v299_v7, 0.0 }
  0x92   : > { %v302_v9 = vrot.slane %v301_v8, 4 }
  0x94   : > { %v303_v10 = vadd.f32 %v302_v9, %v301_v8 }
  0x96   : > { %v304_v11 = vrot.slane %v303_v10, 2 }
  0x98   : > { %v305_v12 = vadd.f32 %v304_v11, %v303_v10 }
  0x9a   : > { %v306_v13 = vrot.slane %v305_v12, 1 }
  0x9c   : > { %v307_v14 = vadd.f32 %v306_v13, %v305_v12 }
  0x9e   : > { %308 = vst [vmem:[%s220_s21] sm:$0x1] %v307_v14 }
  0x9f   : > { %609 = shalt.err (!%p606_p11)
}
  0xa0   : > { %s610_s20 = scalar_lea.hbm %s898_s30, 16  ;;  %s614_s6 = scalar_lea.hbm %s947_s2, 32 }
  0xa1   : > { %p611_p1 = scmp.ne.s32.totalorder %s898_s30, %s610_s20  ;;  %p615_p5 = scmp.lt.u32.totalorder %s898_s30, %s947_s2 }
  0xa2   : > { %p616_p4 = scmp.lt.u32.totalorder %s614_s6, %s610_s20  ;;  %p618_p0 = scmp.lt.u32.totalorder %s610_s20, %s898_s30 }
  0xa3   : > { %p612_p6 = pnand %p611_p1, %p958_p3 }
  0xa4   : > { %p617_p8 = por %p616_p4, %p615_p5 }
  0xa5   : > { %p613_p2 = pneg %p612_p6 }
  0xa6   : > { %p619_p12 = por %p618_p0, %p617_p8 }
  0xa8   : > { %p620_p13 = pnand %p619_p12, %p613_p2 }
  0xaa   : > { %623 = shalt.err (!%p620_p13)
}
  0xab   : > { %453 = dma.vmem_to_hbm [thread:$0]  (%p958_p3), %s893_s8, 16, %s898_s30, %s310_s3  }
  0xac PF: > { %s335_s25 = sand.u32 1, %s662_s9   ;;  %p959_p7 = scmp.ne.s32.totalorder %s953_s24, 0 }
  0xad   : > { %p960_p10 = scmp.ge.s32.totalorder %s682_s14, 2  ;;  %s336_s7 = scalar_lea.sflag [#allocation4], %s335_s25 }
  0xaf   : > { %p463_p9 = pnand %p960_p10, %p959_p7 }
  0xb1   : > { %657 = dma.done.wait (!%p463_p9), %s336_s7, 16  }
  0xb2   : > { %659 = vsyncadd (!%p463_p9), %s336_s7, 4294967280  ;;  %s21_s14 = sadd.s32 1, %s682_s14   ;;  %s961_s9 = smov %s666_s10 }
  0xb3   : > { %p18_p11 = scmp.ge.s32.totalorder %s21_s14, 4   ;;  %s962_s10 = smov %s670_s11 }
  0xb4   : > { %s963_s11 = smov %s760_s23  ;;  %s964_s12 = smov %s678_s13 }
  0xb5   : > { %s965_s13 = smov %s967_s17  ;;  %20 = sbr.rel (!%p18_p11) target bundleno = 8 (0x8), region = 92 }
  0xbc   :  { %340 = vsyncpa [#allocation3], 1 }
  0xbd   :  { %342 = vsyncpa [#allocation3 + $0x1], 1 }
  0xbe   :  { %343 = vsyncpa [#allocation6], 1 }
  0xbf   :  { %345 = vsyncpa [#allocation6 + $0x1], 1 }
  0xc0   :  { %346 = vsyncpa [#allocation4], 1 }
  0xc1   :  { %348 = vsyncpa [#allocation4 + $0x1], 1 }

</bundles_post_ra>
